<compile_context>
chip_gen: v7x
topology: tpu7x:2x2x1
jax: 0.10.0
libtpu: 0.0.40
codegen_flags: <defaults>
</compile_context>

<pallas_src>
import functools

import jax
import jax.numpy as jnp
from jax.experimental import pallas as pl
from jax.experimental.pallas import tpu as pltpu

_INV_SQRT2 = 0.7071067811865476


# ---------------------------------------------------------------------------
# Kernel 1: spectral channel mixing over a block of retained Fourier modes.
# Complex multiply as a single real matmul per mode:
#   [xr | xi] @ [[wr, wi], [-wi, wr]] = [xr@wr - xi@wi | xr@wi + xi@wr]
# ---------------------------------------------------------------------------
def _spectral_kernel(x_ref, w_ref, o_ref):
    # x_ref: (M_BLK, B, 2Ci), w_ref: (M_BLK, 2Ci, 2Co) -> o_ref: (M_BLK, B, 2Co)
    o_ref[...] = jnp.einsum(
        "mbi,mio->mbo", x_ref[...], w_ref[...],
        preferred_element_type=jnp.float32)


def spectral_mode_mul(xc, wc, m_blk=None):
    """xc: (M, B, 2Ci) f32, wc: (M, 2Ci, 2Co) f32 -> (M, B, 2Co) f32."""
    M, B, Ci2 = xc.shape
    Co2 = wc.shape[-1]
    if m_blk is None:
        # 2 grid steps when possible (keeps both v7x TCs busy), else 1.
        m_blk = M // 2 if (M >= 2 and M % 2 == 0) else M
    assert M % m_blk == 0
    return pl.pallas_call(
        _spectral_kernel,
        out_shape=jax.ShapeDtypeStruct((M, B, Co2), jnp.float32),
        grid=(M // m_blk,),
        in_specs=[pl.BlockSpec((m_blk, B, Ci2), lambda m: (m, 0, 0)),
                  pl.BlockSpec((m_blk, Ci2, Co2), lambda m: (m, 0, 0))],
        out_specs=pl.BlockSpec((m_blk, B, Co2), lambda m: (m, 0, 0)),
        compiler_params=pltpu.CompilerParams(
            dimension_semantics=("parallel",)),
    )(xc, wc)


# ---------------------------------------------------------------------------
# Kernel 2: 1x1 conv (channel matmul) + residual add + exact GELU, native NCHW.
# H*W lives in the lane dimension -> lane-dense unmasked stores.
# ---------------------------------------------------------------------------
def _pointwise_kernel(x_ref, f_ref, w_ref, b_ref, o_ref):
    x = x_ref[0]                                        # (Ci, TS)
    y = (jnp.dot(w_ref[...], x, preferred_element_type=jnp.float32)
         + b_ref[...] + f_ref[0])                       # (Co, TS)
    # exact (erf-based) GELU, matching torch.nn.GELU default
    o_ref[0] = 0.5 * y * (1.0 + jax.lax.erf(y * _INV_SQRT2))


def _pick_spatial_tile(hw, max_tile=2048):
    """Largest multiple of 128 dividing hw (<= max_tile); fallback: full hw."""
    best = None
    t = 128
    while t <= min(hw, max_tile):
        if hw % t == 0:
            best = t
        t += 128
    return best if best is not None else hw


def pointwise_add_gelu_nchw(x3, f3, w_t, bias):
    """x3, f3: (B, Ci, S) f32; w_t: (Co, Ci); bias: (Co,) -> (B, Co, S)."""
    B, Ci, S = x3.shape
    Co = w_t.shape[0]
    ts = _pick_spatial_tile(S)
    b2 = bias.reshape(Co, 1).astype(jnp.float32)
    return pl.pallas_call(
        _pointwise_kernel,
        out_shape=jax.ShapeDtypeStruct((B, Co, S), jnp.float32),
        grid=(B, S // ts),
        in_specs=[
            pl.BlockSpec((1, Ci, ts), lambda i, j: (i, 0, j)),
            pl.BlockSpec((1, Co, ts), lambda i, j: (i, 0, j)),
            pl.BlockSpec((Co, Ci), lambda i, j: (0, 0)),
            pl.BlockSpec((Co, 1), lambda i, j: (0, 0)),
        ],
        out_specs=pl.BlockSpec((1, Co, ts), lambda i, j: (i, 0, j)),
        compiler_params=pltpu.CompilerParams(
            dimension_semantics=("parallel", "parallel"),
            vmem_limit_bytes=64 * 1024 * 1024),
    )(x3, f3, w_t.astype(jnp.float32), b2)


# ---------------------------------------------------------------------------
# IO_layer forward
# ---------------------------------------------------------------------------
def io_layer_forward(x, params, k1, k2):
    """x: (B, C, H, W) float32 (NCHW, like PyTorch)."""
    B, C, H, W = x.shape
    Wh = W // 2 + 1

    # ---- fourier_conv_2d branch ----
    x_ft = jnp.fft.rfft2(x)                              # (B, C, H, Wh) complex64
    low = x_ft[:, :, :k1, :k2]
    high = x_ft[:, :, H - k1:, :k2]

    def to_modes(z):                                      # (B,C,k1,k2) -> (k1*k2, B, C)
        return jnp.transpose(z, (2, 3, 0, 1)).reshape(k1 * k2, B, C)

    def to_wmodes(w):                                     # (Ci,Co,k1,k2) -> (k1*k2, Ci, Co)
        return jnp.transpose(w, (2, 3, 0, 1)).reshape(k1 * k2, C, C)

    xin = jnp.concatenate([to_modes(low), to_modes(high)], axis=0)     # (M, B, C)
    xr = jnp.real(xin).astype(jnp.float32)
    xi = jnp.imag(xin).astype(jnp.float32)
    xc = jnp.concatenate([xr, xi], axis=-1)                            # (M, B, 2C)

    wr = jnp.concatenate([to_wmodes(params["w1r"]), to_wmodes(params["w2r"])], axis=0)
    wi = jnp.concatenate([to_wmodes(params["w1i"]), to_wmodes(params["w2i"])], axis=0)
    wc = jnp.concatenate(
        [jnp.concatenate([wr, wi], axis=-1),                           # (M, C, 2C)
         jnp.concatenate([-wi, wr], axis=-1)], axis=1)                 # (M, 2C, 2C)

    out_c = spectral_mode_mul(xc, wc)                                  # (M, B, 2C)
    out_modes = (out_c[..., :C] + 1j * out_c[..., C:]).astype(jnp.complex64)

    def from_modes(z):                                    # (k1*k2, B, C) -> (B, C, k1, k2)
        return jnp.transpose(z.reshape(k1, k2, B, C), (2, 3, 0, 1))

    out_ft = jnp.zeros((B, C, H, Wh), dtype=jnp.complex64)
    out_ft = out_ft.at[:, :, :k1, :k2].set(from_modes(out_modes[: k1 * k2]))
    out_ft = out_ft.at[:, :, H - k1:, :k2].set(from_modes(out_modes[k1 * k2:]))
    x_spec = jnp.fft.irfft2(out_ft, s=(H, W)).astype(jnp.float32)      # (B, C, H, W)

    # ---- 1x1 conv + residual + (dropout p=0 -> identity) + GELU, native NCHW ----
    x3 = x.reshape(B, C, H * W).astype(jnp.float32)
    f3 = x_spec.reshape(B, C, H * W)
    out3 = pointwise_add_gelu_nchw(x3, f3, params["conv_w"].T, params["conv_b"])
    return out3.reshape(B, C, H, W)


# ---------------------------------------------------------------------------
# Pure-JAX reference (mirrors the PyTorch forward exactly)
# ---------------------------------------------------------------------------
def io_layer_reference(x, params, k1, k2):
    B, C, H, W = x.shape
    w1 = params["w1r"] + 1j * params["w1i"]
    w2 = params["w2r"] + 1j * params["w2i"]
    x_ft = jnp.fft.rfft2(x)
    out_ft = jnp.zeros((B, C, H, W // 2 + 1), dtype=jnp.complex64)
    out_ft = out_ft.at[:, :, :k1, :k2].set(
        jnp.einsum("bixy,ioxy->boxy", x_ft[:, :, :k1, :k2], w1))
    out_ft = out_ft.at[:, :, H - k1:, :k2].set(
        jnp.einsum("bixy,ioxy->boxy", x_ft[:, :, H - k1:, :k2], w2))
    x_spec = jnp.fft.irfft2(out_ft, s=(H, W)).real
    conv = jnp.einsum("bihw,io->bohw", x, params["conv_w"]) + params["conv_b"][None, :, None, None]
    y = x_spec + conv
    return 0.5 * y * (1.0 + jax.lax.erf(y * _INV_SQRT2))


# ---------------------------------------------------------------------------
if __name__ == "__main__":
    B, C, H, W = 2, 4, 16, 16
    k1, k2 = 4, 4                      # wavenumber = (4, 4)

    key = jax.random.PRNGKey(0)
    keys = jax.random.split(key, 7)
    scale = 1.0 / (C * C)

    params = {
        # fourier_conv_2d weights: complex (Cin, Cout, k1, k2), uniform[0,1) * scale
        "w1r": scale * jax.random.uniform(keys[0], (C, C, k1, k2), jnp.float32),
        "w1i": scale * jax.random.uniform(keys[1], (C, C, k1, k2), jnp.float32),
        "w2r": scale * jax.random.uniform(keys[2], (C, C, k1, k2), jnp.float32),
        "w2i": scale * jax.random.uniform(keys[3], (C, C, k1, k2), jnp.float32),
        # 1x1 Conv2d: stored as (Cin, Cout) so out = x_cl @ conv_w + conv_b
        "conv_w": 0.5 * jax.random.normal(keys[4], (C, C), jnp.float32),
        "conv_b": 0.1 * jax.random.normal(keys[5], (C,), jnp.float32),
    }

    x = jax.random.normal(keys[6], (B, C, H, W), jnp.float32)

    fwd = jax.jit(functools.partial(io_layer_forward, k1=k1, k2=k2))
    out = fwd(x, params)
    out = jax.block_until_ready(out)

    ref = jax.block_until_ready(io_layer_reference(x, params, k1, k2))
    assert out.shape == (B, C, H, W)
    assert jnp.max(jnp.abs(out - ref)) < 1e-4, float(jnp.max(jnp.abs(out - ref)))

    print("KERNEL_OK")
</pallas_src>

<mosaic_0001>
module attributes {stable_mosaic.version = 11 : i64} {
  func.func @_spectral_kernel(%arg0: i32, %arg1: memref<16x2x8xf32, #tpu.memory_space<vmem>>, %arg2: memref<16x8x8xf32, #tpu.memory_space<vmem>>, %arg3: memref<16x2x8xf32, #tpu.memory_space<vmem>>) attributes {dimension_semantics = [#tpu.dimension_semantics<parallel>], iteration_bounds = array<i64: 2>, scalar_prefetch = 0 : i64, scratch_operands = 0 : i64, tpu.core_type = #tpu.core_type<tc>, window_params = [{transform_indices = @transform_0, window_bounds = array<i64: 16, 2, 8>}, {transform_indices = @transform_1, window_bounds = array<i64: 16, 8, 8>}, {transform_indices = @transform_2, window_bounds = array<i64: 16, 2, 8>}]} {
    %c0 = arith.constant 0 : index
    %c0_0 = arith.constant 0 : index
    %c0_1 = arith.constant 0 : index
    %0 = vector.load %arg1[%c0, %c0_0, %c0_1] : memref<16x2x8xf32, #tpu.memory_space<vmem>>, vector<16x2x8xf32>
    %c0_2 = arith.constant 0 : index
    %c0_3 = arith.constant 0 : index
    %c0_4 = arith.constant 0 : index
    %1 = vector.load %arg2[%c0_2, %c0_3, %c0_4] : memref<16x8x8xf32, #tpu.memory_space<vmem>>, vector<16x8x8xf32>
    "tpu.trace_start"() <{level = 10 : i32, message = "mbi,mio->mbo"}> : () -> ()
    %cst = arith.constant dense<0.000000e+00> : vector<16x2x8xf32>
    %2 = tpu.matmul %0, %1, %cst {dimension_numbers = #tpu.dot_dimension_numbers<[2], [1], [1], [2], [0, 0, 0, 1, 1, 2], [0], [0]>} : vector<16x2x8xf32>, vector<16x8x8xf32>, vector<16x2x8xf32> -> vector<16x2x8xf32>
    "tpu.trace_stop"() : () -> ()
    %c0_5 = arith.constant 0 : index
    %c0_6 = arith.constant 0 : index
    %c0_7 = arith.constant 0 : index
    %3 = vector.load %arg3[%c0_5, %c0_6, %c0_7] : memref<16x2x8xf32, #tpu.memory_space<vmem>>, vector<16x2x8xf32>
    tpu.vector_store %arg3[%c0_5, %c0_6, %c0_7], %2 {strides = array<i32>} : memref<16x2x8xf32, #tpu.memory_space<vmem>>, vector<16x2x8xf32>,
    return
  }
  func.func @transform_0(%arg0: i32) -> (i32, i32, i32) {
    %c0_i32 = arith.constant 0 : i32
    %c0_i32_0 = arith.constant 0 : i32
    %c0_i32_1 = arith.constant 0 : i32
    return %arg0, %c0_i32, %c0_i32_0 : i32, i32, i32
  }
  func.func @transform_1(%arg0: i32) -> (i32, i32, i32) {
    %c0_i32 = arith.constant 0 : i32
    %c0_i32_0 = arith.constant 0 : i32
    %c0_i32_1 = arith.constant 0 : i32
    return %arg0, %c0_i32, %c0_i32_0 : i32, i32, i32
  }
  func.func @transform_2(%arg0: i32) -> (i32, i32, i32) {
    %c0_i32 = arith.constant 0 : i32
    %c0_i32_0 = arith.constant 0 : i32
    %c0_i32_1 = arith.constant 0 : i32
    return %arg0, %c0_i32, %c0_i32_0 : i32, i32, i32
  }
}

module attributes {stable_mosaic.version = 11 : i64} {
  func.func @_pointwise_kernel(%arg0: i32, %arg1: i32, %arg2: memref<1x4x256xf32, #tpu.memory_space<vmem>>, %arg3: memref<1x4x256xf32, #tpu.memory_space<vmem>>, %arg4: memref<4x4xf32, #tpu.memory_space<vmem>>, %arg5: memref<4x1xf32, #tpu.memory_space<vmem>>, %arg6: memref<1x4x256xf32, #tpu.memory_space<vmem>>) attributes {dimension_semantics = [#tpu.dimension_semantics<parallel>, #tpu.dimension_semantics<parallel>], iteration_bounds = array<i64: 2, 1>, scalar_prefetch = 0 : i64, scratch_operands = 0 : i64, tpu.core_type = #tpu.core_type<tc>, window_params = [{transform_indices = @transform_0, window_bounds = array<i64: 1, 4, 256>}, {transform_indices = @transform_1, window_bounds = array<i64: 1, 4, 256>}, {pipeline_mode = #tpu.pipeline_mode<synchronous>, transform_indices = @transform_2, window_bounds = array<i64: 4, 4>}, {pipeline_mode = #tpu.pipeline_mode<synchronous>, transform_indices = @transform_3, window_bounds = array<i64: 4, 1>}, {transform_indices = @transform_4, window_bounds = array<i64: 1, 4, 256>}]} {
    %c0 = arith.constant 0 : index
    %c0_0 = arith.constant 0 : index
    %c0_1 = arith.constant 0 : index
    %0 = vector.load %arg2[%c0, %c0_0, %c0_1] : memref<1x4x256xf32, #tpu.memory_space<vmem>>, vector<1x4x256xf32>
    %1 = vector.shape_cast %0 : vector<1x4x256xf32> to vector<4x256xf32>
    %c0_2 = arith.constant 0 : index
    %c0_3 = arith.constant 0 : index
    %2 = vector.load %arg4[%c0_2, %c0_3] : memref<4x4xf32, #tpu.memory_space<vmem>>, vector<4x4xf32>
    %cst = arith.constant dense<0.000000e+00> : vector<4x256xf32>
    %3 = tpu.matmul %2, %1, %cst {dimension_numbers = #tpu.dot_dimension_numbers<[1], [0], [0], [1], [0, 0, 1, 1], [], []>} : vector<4x4xf32>, vector<4x256xf32>, vector<4x256xf32> -> vector<4x256xf32>
    %c0_4 = arith.constant 0 : index
    %c0_5 = arith.constant 0 : index
    %4 = vector.load %arg5[%c0_4, %c0_5] : memref<4x1xf32, #tpu.memory_space<vmem>>, vector<4x1xf32>
    %5 = vector.broadcast %4 : vector<4x1xf32> to vector<4x256xf32>
    %6 = arith.addf %3, %5 : vector<4x256xf32>
    %c0_6 = arith.constant 0 : index
    %c0_7 = arith.constant 0 : index
    %c0_8 = arith.constant 0 : index
    %7 = vector.load %arg3[%c0_6, %c0_7, %c0_8] : memref<1x4x256xf32, #tpu.memory_space<vmem>>, vector<1x4x256xf32>
    %8 = vector.shape_cast %7 : vector<1x4x256xf32> to vector<4x256xf32>
    %9 = arith.addf %6, %8 : vector<4x256xf32>
    %cst_9 = arith.constant 5.000000e-01 : f32
    %10 = vector.broadcast %cst_9 : f32 to vector<4x256xf32>
    %11 = arith.mulf %10, %9 : vector<4x256xf32>
    %cst_10 = arith.constant 0.707106769 : f32
    %12 = vector.broadcast %cst_10 : f32 to vector<4x256xf32>
    %13 = arith.mulf %9, %12 : vector<4x256xf32>
    %14 = math.erf %13 : vector<4x256xf32>
    %cst_11 = arith.constant 1.000000e+00 : f32
    %15 = vector.broadcast %cst_11 : f32 to vector<4x256xf32>
    %16 = arith.addf %15, %14 : vector<4x256xf32>
    %17 = arith.mulf %11, %16 : vector<4x256xf32>
    %c0_12 = arith.constant 0 : index
    %c0_13 = arith.constant 0 : index
    %c0_14 = arith.constant 0 : index
    %18 = vector.load %arg6[%c0_12, %c0_13, %c0_14] : memref<1x4x256xf32, #tpu.memory_space<vmem>>, vector<1x4x256xf32>
    %19 = vector.shape_cast %18 : vector<1x4x256xf32> to vector<4x256xf32>
    %20 = vector.shape_cast %17 : vector<4x256xf32> to vector<1x4x256xf32>
    tpu.vector_store %arg6[%c0_12, %c0_13, %c0_14], %20 {strides = array<i32>} : memref<1x4x256xf32, #tpu.memory_space<vmem>>, vector<1x4x256xf32>,
    return
  }
  func.func @transform_0(%arg0: i32, %arg1: i32) -> (i32, i32, i32) {
    %c0_i32 = arith.constant 0 : i32
    %c0_i32_0 = arith.constant 0 : i32
    return %arg0, %c0_i32, %arg1 : i32, i32, i32
  }
  func.func @transform_1(%arg0: i32, %arg1: i32) -> (i32, i32, i32) {
    %c0_i32 = arith.constant 0 : i32
    %c0_i32_0 = arith.constant 0 : i32
    return %arg0, %c0_i32, %arg1 : i32, i32, i32
  }
  func.func @transform_2(%arg0: i32, %arg1: i32) -> (i32, i32) {
    %c0_i32 = arith.constant 0 : i32
    %c0_i32_0 = arith.constant 0 : i32
    %c0_i32_1 = arith.constant 0 : i32
    return %c0_i32, %c0_i32_0 : i32, i32
  }
  func.func @transform_3(%arg0: i32, %arg1: i32) -> (i32, i32) {
    %c0_i32 = arith.constant 0 : i32
    %c0_i32_0 = arith.constant 0 : i32
    %c0_i32_1 = arith.constant 0 : i32
    return %c0_i32, %c0_i32_0 : i32, i32
  }
  func.func @transform_4(%arg0: i32, %arg1: i32) -> (i32, i32, i32) {
    %c0_i32 = arith.constant 0 : i32
    %c0_i32_0 = arith.constant 0 : i32
    return %arg0, %c0_i32, %arg1 : i32, i32, i32
  }
}

</mosaic_0001>

<bundles_post_ra>
// kernel: reverse.0
= control target key start
LH: loop header
LB: loop body
LE: loop exit
PB: predicated region body
PF: predicated region fallthrough
CT: control target
= control target key end

     0   :  { %v71_v3 = vlaneseq  ;;  %v64_v9 = vld [vmem:[#allocation0 + $0x7] ss:$-1 sm:$0xff]  ;;  %v78_v12 = vld [vmem:[#allocation0 + $0x17] ss:$-1 sm:$0xff]  ;;  %s329_s0 = inlined_call_operand.vmem [shape: f32[2,4,16,7], index: 0, kind: input, shape index: {}]   ;;  %s330_s1 = inlined_call_operand.vmem [shape: f32[2,4,16,7], index: 1, kind: output, shape index: {}]  }
   0x1   :  { %v44_v0 = vld [vmem:[%s329_s0] sm:$0xff]  ;;  %v46_v1 = vld [vmem:[%s329_s0 + $0x8] sm:$0xff]  ;;  %v48_v2 = vld [vmem:[%s329_s0 + $0x10] sm:$0xff]  ;;  %v65_v10 = vrot.slane %v64_v9, 1  ;;  %v79_v14 = vrot.slane %v78_v12, 1 }
   0x2   :  { %45 = vst [vmem:[#allocation0 + $0x8] sm:$0xff] %v44_v0  ;;  %47 = vst [vmem:[#allocation0 + $0x18] sm:$0xff] %v46_v1  ;;  %v50_v4 = vld [vmem:[%s329_s0 + $0x18] sm:$0xff]  ;;  %v52_v5 = vld [vmem:[%s329_s0 + $0x20] sm:$0xff]  ;;  %v72_v11 = vshrl.u32 %v71_v3, 7 }
   0x3   :  { %49 = vst [vmem:[#allocation0 + $0x28] sm:$0xff] %v48_v2  ;;  %v54_v6 = vld [vmem:[%s329_s0 + $0x28] sm:$0xff]  ;;  %51 = vst [vmem:[#allocation0 + $0x38] sm:$0xff] %v50_v4  ;;  %v56_v7 = vld [vmem:[%s329_s0 + $0x30] sm:$0xff] }
   0x4   :  { %53 = vst [vmem:[#allocation0 + $0x48] sm:$0xff] %v52_v5  ;;  %55 = vst [vmem:[#allocation0 + $0x58] sm:$0xff] %v54_v6  ;;  %v58_v8 = vld [vmem:[%s329_s0 + $0x38] sm:$0xff]  ;;  %v92_v13 = vld [vmem:[#allocation0 + $0x27] ss:$-1 sm:$0xff]  ;;  %vm73_vm0 = vcmp.lt.s32.totalorder %v72_v11, 7 }
   0x5   :  { %57 = vst [vmem:[#allocation0 + $0x68] sm:$0xff] %v56_v7  ;;  %59 = vst [vmem:[#allocation0 + $0x78] sm:$0xff] %v58_v8  ;;  %v93_v15 = vrot.slane %v92_v13, 1  ;;  %v106_v16 = vld [vmem:[#allocation0 + $0x37] ss:$-1 sm:$0xff] }
   0x6   :  { %66 = vst [vmem:[#allocation1] sm:$0xff] %v65_v10  ;;  %v107_v17 = vrot.slane %v106_v16, 1  ;;  %v120_v18 = vld [vmem:[#allocation0 + $0x47] ss:$-1 sm:$0xff]  ;;  %v134_v19 = vld [vmem:[#allocation0 + $0x57] ss:$-1 sm:$0xff] }
   0x7   :  { %80 = vst [vmem:[#allocation1 + $0x8] sm:$0xff] %v79_v14  ;;  %94 = vst [vmem:[#allocation1 + $0x10] sm:$0xff] %v93_v15  ;;  %v121_v20 = vrot.slane %v120_v18, 1  ;;  %v135_v21 = vrot.slane %v134_v19, 1  ;;  %v148_v22 = vld [vmem:[#allocation0 + $0x67] ss:$-1 sm:$0xff] }
   0x8   :  { %v162_v23 = vld [vmem:[#allocation0 + $0x77] ss:$-1 sm:$0xff]  ;;  %108 = vst [vmem:[#allocation1 + $0x18] sm:$0xff] %v107_v17  ;;  %v149_v24 = vrot.slane %v148_v22, 1 }
   0x9   :  { %v163_v25 = vrot.slane %v162_v23, 1  ;;  %v69_v26 = vld [vmem:[#allocation0 + $0xf] ss:$-1 sm:$0xff]  ;;  %v83_v27 = vld [vmem:[#allocation0 + $0x1f] ss:$-1 sm:$0xff]  ;;  %122 = vst [vmem:[#allocation1 + $0x20] sm:$0xff] %v121_v20 }
   0xa   :  { %v97_v28 = vld [vmem:[#allocation0 + $0x2f] ss:$-1 sm:$0xff]  ;;  %136 = vst [vmem:[#allocation1 + $0x28] sm:$0xff] %v135_v21  ;;  %v70_v29 = vrot.slane %v69_v26, 1  ;;  %v84_v30 = vrot.slane %v83_v27, 1  ;;  %150 = vst [vmem:[#allocation1 + $0x30] sm:$0xff] %v149_v24 }
   0xb   :  { %v98_v31 = vrot.slane %v97_v28, 1  ;;  %v111_v32 = vld [vmem:[#allocation0 + $0x3f] ss:$-1 sm:$0xff]  ;;  %164 = vst [vmem:[#allocation1 + $0x38] sm:$0xff] %v163_v25  ;;  %v125_v34 = vld [vmem:[#allocation0 + $0x4f] ss:$-1 sm:$0xff] }
   0xc   :  { %v112_v33 = vrot.slane %v111_v32, 1  ;;  %v139_v35 = vld [vmem:[#allocation0 + $0x5f] ss:$-1 sm:$0xff]  ;;  %74 = vst.msk [vmem:[#allocation1] sm:$0xff] %vm73_vm0, %v70_v29  ;;  %88 = vst.msk [vmem:[#allocation1 + $0x8] sm:$0xff] %vm73_vm0, %v84_v30  ;;  %v126_v36 = vrot.slane %v125_v34, 1 }
   0xd   :  { %102 = vst.msk [vmem:[#allocation1 + $0x10] sm:$0xff] %vm73_vm0, %v98_v31  ;;  %v140_v37 = vrot.slane %v139_v35, 1  ;;  %v153_v38 = vld [vmem:[#allocation0 + $0x6f] ss:$-1 sm:$0xff]  ;;  %v167_v39 = vld [vmem:[#allocation0 + $0x7f] ss:$-1 sm:$0xff] }
   0xe   :  { %116 = vst.msk [vmem:[#allocation1 + $0x18] sm:$0xff] %vm73_vm0, %v112_v33  ;;  %v154_v40 = vrot.slane %v153_v38, 1  ;;  %v168_v41 = vrot.slane %v167_v39, 1  ;;  %130 = vst.msk [vmem:[#allocation1 + $0x20] sm:$0xff] %vm73_vm0, %v126_v36 }
   0xf   :  { %144 = vst.msk [vmem:[#allocation1 + $0x28] sm:$0xff] %vm73_vm0, %v140_v37 }
  0x10   :  { %158 = vst.msk [vmem:[#allocation1 + $0x30] sm:$0xff] %vm73_vm0, %v154_v40  ;;  %172 = vst.msk [vmem:[#allocation1 + $0x38] sm:$0xff] %vm73_vm0, %v168_v41 }
  0x13   :  { %v214_v42 = vld [vmem:[#allocation1] sm:$0xff]  ;;  %v216_v43 = vld [vmem:[#allocation1 + $0x8] sm:$0xff] }
  0x14   :  { %v218_v44 = vld [vmem:[#allocation1 + $0x10] sm:$0xff]  ;;  %215 = vst [vmem:[%s330_s1] sm:$0xff] %v214_v42  ;;  %217 = vst [vmem:[%s330_s1 + $0x8] sm:$0xff] %v216_v43 }
  0x15   :  { %219 = vst [vmem:[%s330_s1 + $0x10] sm:$0xff] %v218_v44  ;;  %v220_v45 = vld [vmem:[#allocation1 + $0x18] sm:$0xff]  ;;  %v222_v46 = vld [vmem:[#allocation1 + $0x20] sm:$0xff] }
  0x16   :  { %221 = vst [vmem:[%s330_s1 + $0x18] sm:$0xff] %v220_v45  ;;  %v224_v47 = vld [vmem:[#allocation1 + $0x28] sm:$0xff]  ;;  %223 = vst [vmem:[%s330_s1 + $0x20] sm:$0xff] %v222_v46 }
  0x17   :  { %225 = vst [vmem:[%s330_s1 + $0x28] sm:$0xff] %v224_v47  ;;  %v226_v48 = vld [vmem:[#allocation1 + $0x30] sm:$0xff]  ;;  %v228_v49 = vld [vmem:[#allocation1 + $0x38] sm:$0xff] }
  0x18   :  { %227 = vst [vmem:[%s330_s1 + $0x30] sm:$0xff] %v226_v48  ;;  %229 = vst [vmem:[%s330_s1 + $0x38] sm:$0xff] %v228_v49 }

// kernel: io_layer_forward.2
= control target key start
LH: loop header
LB: loop body
LE: loop exit
PB: predicated region body
PF: predicated region fallthrough
CT: control target
= control target key end

     0   :  { %s1631_s9 = smov 0   ;;  %s1793_s0 = inlined_call_operand.vmem [shape: f32[32,2,8], index: 0, kind: input, shape index: {}]   ;;  %s1794_s1 = inlined_call_operand.vmem [shape: f32[32,8,8], index: 1, kind: input, shape index: {}]   ;;  %s1795_s2 = inlined_call_operand.vmem [shape: f32[32,2,8], index: 2, kind: output, shape index: {}]  }
   0x1 LB: > { %s1455_s10 = sadd.s32 4294967295, %s1612_s9   ;;  %p1459_p0 = scmp.ge.s32.totalorder %s1612_s9, 1  ;;  %s1612_s9 = sphi %s1631_s9, %s12_s9  }
   0x2   : > { %p124_p1 = scmp.lt.s32.totalorder %s1612_s9, 3 }
   0x4   : > { %p125_p2 = pnand %p1459_p0, %p124_p1 }
   0x5   : > { %s1460_s11 = sshll.u32 (!%p125_p2), %s1455_s10, 4  ;;  %v1614_v0 = vmov (!%p125_p2), 0.0   ;;  %vm1615_vm0 = vmmov (!%p125_p2), 0   ;;  %vm201_vm1 = vcmask (!%p125_p2), 64512   ;;  %vm1370_vm2 = vcmask (!%p125_p2), 58368  }
   0x6   : > { %128 = sbr.rel (%p125_p2) target bundleno = 259 (0x103), region = 28  ;;  %1516 = vmatprep.subr.mxu0 (!%p125_p2), %v1614_v0  ;;  %1521 = vmatprep.subr.mxu1 (!%p125_p2), %v1614_v0  ;;  %p152_p3 = scmp.lt.s32.totalorder (!%p125_p2), %s1460_s11, 31 }
   0x7   : > { %1518 = vmatprep.mubr.msk.f32.mxu0 (!%p125_p2), %vm1615_vm0, %v1614_v0  ;;  %1523 = vmatprep.mubr.msk.f32.mxu1 (!%p125_p2), %vm1615_vm0, %v1614_v0 }
   0xd   : > { %s1797_s11 = smov (!%p152_p3, %s1460_s11), 31 }
   0xe   : > { %s1463_s12 = sshll.u32 %s1797_s11, 3  ;;  %s1461_s13 = sshll.u32 %s1797_s11, 1 }
   0xf   : > { %s1652_s16 = scalar_lea.vmem %s1794_s1, %s1463_s12  ;;  %s1659_s19 = scalar_lea.vmem %s1793_s0, %s1461_s13 }
  0x10   : > { %v185_v1 = vld [vmem:[%s1652_s16] sm:$0xff]  ;;  %v186_v2 = vld [vmem:[%s1652_s16 + $0x8] sm:$0xff]  ;;  %v187_v5 = vld [vmem:[%s1652_s16 + $0x10] sm:$0xff]  ;;  %s1756_s22 = scalar_lea.vmem %s1795_s2, %s1461_s13 }
  0x11   : > { %v169_v3 = vld [vmem:[%s1659_s19] sm:$0x3]  ;;  %1517 = vmatpush3.msra.mxu0 %v185_v1  ;;  %1522 = vmatpush3.msra.mxu1 %v186_v2  ;;  %v170_v4 = vld [vmem:[%s1659_s19 + $0x2] sm:$0x3]  ;;  %v188_v6 = vld [vmem:[%s1652_s16 + $0x18] sm:$0xff] }
  0x12   : > { %1519 = vmatmul.mubr.msk.f32.vlgmr.msra.gmra.mrb[0].mxu0 %vm201_vm1, %v169_v3  ;;  %1524 = vmatmul.mubr.msk.f32.vlgmr.msra.gmra.mrb[0].mxu1 %vm201_vm1, %v170_v4  ;;  %v171_v7 = vld [vmem:[%s1659_s19 + $0x4] sm:$0x3]  ;;  %v172_v8 = vld [vmem:[%s1659_s19 + $0x6] sm:$0x3]  ;;  %v190_v10 = vld [vmem:[%s1652_s16 + $0x28] sm:$0xff] }
  0x13   : > { %1526 = vmatprep.subr.mxu0 %v1614_v0  ;;  %1531 = vmatprep.subr.mxu1 %v1614_v0  ;;  %v189_v9 = vld [vmem:[%s1652_s16 + $0x20] sm:$0xff]  ;;  %v173_v11 = vld [vmem:[%s1659_s19 + $0x8] sm:$0x3]  ;;  %v174_v12 = vld [vmem:[%s1659_s19 + $0xa] sm:$0x3] }
  0x14   : > { %1527 = vmatpush3.msra.mxu0 %v187_v5  ;;  %1532 = vmatpush3.msra.mxu1 %v188_v6  ;;  %v191_v13 = vld [vmem:[%s1652_s16 + $0x30] sm:$0xff]  ;;  %v192_v14 = vld [vmem:[%s1652_s16 + $0x38] sm:$0xff]  ;;  %v175_v15 = vld [vmem:[%s1659_s19 + $0xc] sm:$0x3] }
  0x15   : > { %1528 = vmatprep.mubr.msk.f32.mxu0 %vm1615_vm0, %v1614_v0  ;;  %1533 = vmatprep.mubr.msk.f32.mxu1 %vm1615_vm0, %v1614_v0  ;;  %v176_v16 = vld [vmem:[%s1659_s19 + $0xe] sm:$0x3]  ;;  %v193_v17 = vld [vmem:[%s1652_s16 + $0x40] sm:$0xff]  ;;  %v177_v19 = vld [vmem:[%s1659_s19 + $0x10] sm:$0x3] }
  0x16   : > { %1529 = vmatmul.mubr.msk.f32.vlgmr.msra.gmra.mrb[2].mxu0 %vm201_vm1, %v171_v7  ;;  %1534 = vmatmul.mubr.msk.f32.vlgmr.msra.gmra.mrb[2].mxu1 %vm201_vm1, %v172_v8  ;;  %v194_v18 = vld [vmem:[%s1652_s16 + $0x48] sm:$0xff]  ;;  %v178_v20 = vld [vmem:[%s1659_s19 + $0x12] sm:$0x3]  ;;  %v196_v22 = vld [vmem:[%s1652_s16 + $0x58] sm:$0xff] }
  0x17   : > { %1536 = vmatprep.subr.mxu0 %v1614_v0  ;;  %1541 = vmatprep.subr.mxu1 %v1614_v0  ;;  %v195_v21 = vld [vmem:[%s1652_s16 + $0x50] sm:$0xff]  ;;  %v197_v25 = vld [vmem:[%s1652_s16 + $0x60] sm:$0xff]  ;;  %v198_v26 = vld [vmem:[%s1652_s16 + $0x68] sm:$0xff] }
  0x18   : > { %1537 = vmatpush3.msra.mxu0 %v189_v9  ;;  %1542 = vmatpush3.msra.mxu1 %v190_v10  ;;  %v179_v23 = vld [vmem:[%s1659_s19 + $0x14] sm:$0x3]  ;;  %v180_v24 = vld [vmem:[%s1659_s19 + $0x16] sm:$0x3]  ;;  %v181_v27 = vld [vmem:[%s1659_s19 + $0x18] sm:$0x3] }
  0x19   : > { %1538 = vmatprep.mubr.msk.f32.mxu0 %vm1615_vm0, %v1614_v0  ;;  %1543 = vmatprep.mubr.msk.f32.mxu1 %vm1615_vm0, %v1614_v0  ;;  %v182_v28 = vld [vmem:[%s1659_s19 + $0x1a] sm:$0x3]  ;;  %v199_v29 = vld [vmem:[%s1652_s16 + $0x70] sm:$0xff]  ;;  %v183_v31 = vld [vmem:[%s1659_s19 + $0x1c] sm:$0x3] }
  0x1a   : > { %1539 = vmatmul.mubr.msk.f32.vlgmr.msra.gmra.mrb[4].mxu0 %vm201_vm1, %v173_v11  ;;  %1544 = vmatmul.mubr.msk.f32.vlgmr.msra.gmra.mrb[4].mxu1 %vm201_vm1, %v174_v12  ;;  %v200_v30 = vld [vmem:[%s1652_s16 + $0x78] sm:$0xff] }
  0x1b   : > { %1546 = vmatprep.subr.mxu0 %v1614_v0  ;;  %1551 = vmatprep.subr.mxu1 %v1614_v0  ;;  %v184_v32 = vld [vmem:[%s1659_s19 + $0x1e] sm:$0x3] }
  0x1c   : > { %1547 = vmatpush3.msra.mxu0 %v191_v13  ;;  %1552 = vmatpush3.msra.mxu1 %v192_v14 }
  0x1d   : > { %1548 = vmatprep.mubr.msk.f32.mxu0 %vm1615_vm0, %v1614_v0  ;;  %1553 = vmatprep.mubr.msk.f32.mxu1 %vm1615_vm0, %v1614_v0 }
  0x1e   : > { %1549 = vmatmul.mubr.msk.f32.vlgmr.msra.gmra.mrb[6].mxu0 %vm201_vm1, %v175_v15  ;;  %1554 = vmatmul.mubr.msk.f32.vlgmr.msra.gmra.mrb[6].mxu1 %vm201_vm1, %v176_v16 }
  0x1f   : > { %1556 = vmatprep.subr.mxu0 %v1614_v0  ;;  %1561 = vmatprep.subr.mxu1 %v1614_v0 }
  0x20   : > { %1557 = vmatpush3.msra.mxu0 %v193_v17  ;;  %1562 = vmatpush3.msra.mxu1 %v194_v18 }
  0x21   : > { %1558 = vmatprep.mubr.msk.f32.mxu0 %vm1615_vm0, %v1614_v0  ;;  %1563 = vmatprep.mubr.msk.f32.mxu1 %vm1615_vm0, %v1614_v0 }
  0x22   : > { %1559 = vmatmul.mubr.msk.f32.vlgmr.msra.gmra.mrb[8].mxu0 %vm201_vm1, %v177_v19  ;;  %1564 = vmatmul.mubr.msk.f32.vlgmr.msra.gmra.mrb[8].mxu1 %vm201_vm1, %v178_v20 }
  0x23   : > { %1566 = vmatprep.subr.mxu0 %v1614_v0  ;;  %1571 = vmatprep.subr.mxu1 %v1614_v0 }
  0x24   : > { %1567 = vmatpush3.msra.mxu0 %v195_v21  ;;  %1572 = vmatpush3.msra.mxu1 %v196_v22 }
  0x25   : > { %1568 = vmatprep.mubr.msk.f32.mxu0 %vm1615_vm0, %v1614_v0  ;;  %1573 = vmatprep.mubr.msk.f32.mxu1 %vm1615_vm0, %v1614_v0 }
  0x26   : > { %1569 = vmatmul.mubr.msk.f32.vlgmr.msra.gmra.mrb[10].mxu0 %vm201_vm1, %v179_v23  ;;  %1574 = vmatmul.mubr.msk.f32.vlgmr.msra.gmra.mrb[10].mxu1 %vm201_vm1, %v180_v24 }
  0x27   : > { %1576 = vmatprep.subr.mxu0 %v1614_v0  ;;  %1581 = vmatprep.subr.mxu1 %v1614_v0 }
  0x28   : > { %1577 = vmatpush3.msra.mxu0 %v197_v25  ;;  %1582 = vmatpush3.msra.mxu1 %v198_v26 }
  0x29   : > { %1578 = vmatprep.mubr.msk.f32.mxu0 %vm1615_vm0, %v1614_v0  ;;  %1583 = vmatprep.mubr.msk.f32.mxu1 %vm1615_vm0, %v1614_v0 }
  0x2a   : > { %1579 = vmatmul.mubr.msk.f32.vlgmr.msra.gmra.mrb[12].mxu0 %vm201_vm1, %v181_v27  ;;  %1584 = vmatmul.mubr.msk.f32.vlgmr.msra.gmra.mrb[12].mxu1 %vm201_vm1, %v182_v28 }
  0x2b   : > { %1586 = vmatprep.subr.mxu0 %v1614_v0  ;;  %1591 = vmatprep.subr.mxu1 %v1614_v0 }
  0x2c   : > { %1587 = vmatpush3.msra.mxu0 %v199_v29  ;;  %1592 = vmatpush3.msra.mxu1 %v200_v30 }
  0x2d   : > { %1588 = vmatprep.mubr.msk.f32.mxu0 %vm1615_vm0, %v1614_v0  ;;  %1593 = vmatprep.mubr.msk.f32.mxu1 %vm1615_vm0, %v1614_v0 }
  0x2e   : > { %1589 = vmatmul.mubr.msk.f32.vlgmr.msra.gmra.mrb[14].mxu0 %vm201_vm1, %v183_v31  ;;  %1594 = vmatmul.mubr.msk.f32.vlgmr.msra.gmra.mrb[14].mxu1 %vm201_vm1, %v184_v32 }
  0xe5   : > { %v271_v33 = vpop.f32.mrb[0].mxu0  ;;  %v344_v34 = vpop.f32.mrb[0].mxu1 }
  0xe6   : > { %1371 = vst.msk [vmem:[%s1756_s22] sm:$0x3] %vm1370_vm2, %v271_v33  ;;  %1372 = vst.msk [vmem:[%s1756_s22 + $0x2] sm:$0x3] %vm1370_vm2, %v344_v34  ;;  %v1520_v35 = vpop.f32.mrb[1].mxu0  ;;  %v1525_v36 = vpop.f32.mrb[1].mxu1 }
  0xe9   : > { %v417_v37 = vpop.f32.mrb[2].mxu0  ;;  %v490_v38 = vpop.f32.mrb[2].mxu1 }
  0xea   : > { %1373 = vst.msk [vmem:[%s1756_s22 + $0x4] sm:$0x3] %vm1370_vm2, %v417_v37  ;;  %1374 = vst.msk [vmem:[%s1756_s22 + $0x6] sm:$0x3] %vm1370_vm2, %v490_v38  ;;  %v1530_v39 = vpop.f32.mrb[3].mxu0  ;;  %v1535_v40 = vpop.f32.mrb[3].mxu1 }
  0xed   : > { %v563_v41 = vpop.f32.mrb[4].mxu0  ;;  %v636_v42 = vpop.f32.mrb[4].mxu1 }
  0xee   : > { %1375 = vst.msk [vmem:[%s1756_s22 + $0x8] sm:$0x3] %vm1370_vm2, %v563_v41  ;;  %1376 = vst.msk [vmem:[%s1756_s22 + $0xa] sm:$0x3] %vm1370_vm2, %v636_v42  ;;  %v1540_v43 = vpop.f32.mrb[5].mxu0  ;;  %v1545_v44 = vpop.f32.mrb[5].mxu1 }
  0xf1   : > { %v709_v45 = vpop.f32.mrb[6].mxu0  ;;  %v782_v46 = vpop.f32.mrb[6].mxu1 }
  0xf2   : > { %1377 = vst.msk [vmem:[%s1756_s22 + $0xc] sm:$0x3] %vm1370_vm2, %v709_v45  ;;  %1378 = vst.msk [vmem:[%s1756_s22 + $0xe] sm:$0x3] %vm1370_vm2, %v782_v46  ;;  %v1550_v47 = vpop.f32.mrb[7].mxu0  ;;  %v1555_v48 = vpop.f32.mrb[7].mxu1 }
  0xf5   : > { %v855_v49 = vpop.f32.mrb[8].mxu0  ;;  %v928_v50 = vpop.f32.mrb[8].mxu1 }
  0xf6   : > { %1379 = vst.msk [vmem:[%s1756_s22 + $0x10] sm:$0x3] %vm1370_vm2, %v855_v49  ;;  %1380 = vst.msk [vmem:[%s1756_s22 + $0x12] sm:$0x3] %vm1370_vm2, %v928_v50  ;;  %v1560_v51 = vpop.f32.mrb[9].mxu0  ;;  %v1565_v52 = vpop.f32.mrb[9].mxu1 }
  0xf9   : > { %v1001_v53 = vpop.f32.mrb[10].mxu0  ;;  %v1074_v54 = vpop.f32.mrb[10].mxu1 }
  0xfa   : > { %1381 = vst.msk [vmem:[%s1756_s22 + $0x14] sm:$0x3] %vm1370_vm2, %v1001_v53  ;;  %1382 = vst.msk [vmem:[%s1756_s22 + $0x16] sm:$0x3] %vm1370_vm2, %v1074_v54  ;;  %v1570_v55 = vpop.f32.mrb[11].mxu0  ;;  %v1575_v56 = vpop.f32.mrb[11].mxu1 }
  0xfd   : > { %v1147_v57 = vpop.f32.mrb[12].mxu0  ;;  %v1220_v58 = vpop.f32.mrb[12].mxu1 }
  0xfe   : > { %1383 = vst.msk [vmem:[%s1756_s22 + $0x18] sm:$0x3] %vm1370_vm2, %v1147_v57  ;;  %1384 = vst.msk [vmem:[%s1756_s22 + $0x1a] sm:$0x3] %vm1370_vm2, %v1220_v58  ;;  %v1580_v59 = vpop.f32.mrb[13].mxu0  ;;  %v1585_v60 = vpop.f32.mrb[13].mxu1 }
 0x101   : > { %v1293_v61 = vpop.f32.mrb[14].mxu0  ;;  %v1366_v62 = vpop.f32.mrb[14].mxu1 }
 0x102   : > { %1385 = vst.msk [vmem:[%s1756_s22 + $0x1c] sm:$0x3] %vm1370_vm2, %v1293_v61  ;;  %1386 = vst.msk [vmem:[%s1756_s22 + $0x1e] sm:$0x3] %vm1370_vm2, %v1366_v62  ;;  %v1590_v63 = vpop.f32.mrb[15].mxu0  ;;  %v1595_v0 = vpop.f32.mrb[15].mxu1 }
 0x103 PF: > { %s12_s9 = sadd.s32 1, %s1612_s9  }
 0x104   : > { %p9_p4 = scmp.ge.s32.totalorder %s12_s9, 4  }
 0x106   :  { %11 = sbr.rel (!%p9_p4) target bundleno = 1 (0x1), region = 61 }

// kernel: io_layer_forward.3
= control target key start
LH: loop header
LB: loop body
LE: loop exit
PB: predicated region body
PF: predicated region fallthrough
CT: control target
= control target key end

     0   :  { %s1211_s0 = inlined_call_operand.hbm [shape: f32[2,4,256], index: 0, kind: input, shape index: {}]   ;;  %s1212_s1 = inlined_call_operand.hbm [shape: f32[2,4,256], index: 1, kind: input, shape index: {}]   ;;  %s1213_s2 = inlined_call_operand.hbm [shape: f32[4,4], index: 2, kind: input, shape index: {}]   ;;  %s1214_s3 = inlined_call_operand.hbm [shape: f32[4,1], index: 3, kind: input, shape index: {}]   ;;  %s1215_s4 = inlined_call_operand.hbm [shape: f32[2,4,256], index: 4, kind: output, shape index: {}]  }
   0x1   :  { %1221 = sst [smem:[#allocation17_spill]] %s1213_s2 }
   0x2   :  { %1222 = sst [smem:[#allocation18_spill]] %s1214_s3 }
   0x3   :  { %9 = vsyncpa [#allocation3], 0 }
   0x4   :  { %11 = vsyncpa [#allocation3 + $0x1], 0 }
   0x5   :  { %12 = vsyncpa [#allocation6], 0 }
   0x6   :  { %14 = vsyncpa [#allocation6 + $0x1], 0 }
   0x7   :  { %15 = vsyncpa [#allocation9], 0 }
   0x8   :  { %16 = vsyncpa [#allocation4], 0 }
   0x9   :  { %18 = vsyncpa [#allocation4 + $0x1], 0  ;;  %s929_s15 = smov 0   ;;  %s931_s16 = smov 0  }
   0xa   :  { %s933_s17 = smov 0   ;;  %s935_s18 = smov 0  }
   0xb   :  { %s937_s19 = smov 0   ;;  %s939_s20 = smov 0  }
   0xc LB: > { %s960_s21 = sadd.s32 4294967295, %s895_s20   ;;  %s560_s22 = sadd.s32 4294967294, %s895_s20   ;;  %s895_s20 = sphi %s939_s20, %s24_s20   ;;  %s891_s19 = sphi %s937_s19, %s1247_s19   ;;  %s887_s18 = sphi %s935_s18, %s1246_s18   ;;  %s883_s17 = sphi %s933_s17, %s1245_s17   ;;  %s879_s16 = sphi %s931_s16, %s1244_s16   ;;  %s875_s15 = sphi %s929_s15, %s1243_s15  }
   0xd   : > { %p58_p0 = scmp.ne.s32.totalorder %s879_s16, %s875_s15  ;;  %p1216_p1 = scmp.eq.s32.totalorder %s960_s21, 0 }
   0xe   : > { %p160_p3 = scmp.eq.s32.totalorder %s560_s22, 1  ;;  %p561_p5 = scmp.ge.s32.totalorder %s895_s20, 1 }
   0xf   : > { %p969_p4 = por %p1216_p1, %p58_p0  ;;  %p167_p7 = scmp.lt.s32.totalorder %s895_s20, 3 }
  0x10   : > { %p974_p6 = por %p160_p3, %p58_p0  ;;  %s897_s26 = smov [#allocation7]  }
  0x11   : > { %s1223_s23 = scalar_select %p969_p4, 1, 0 }
  0x12   : > { %s1224_s24 = scalar_select %p974_p6, 1, 0 }
  0x13   : > { %p979_p8 = pnand %p561_p5, %p167_p7  ;;  %s180_s27 = sshll.u32 %s897_s26, 4  ;;  %s181_s27 = int_to_ptr.vmem [resolvable:$true] %s180_s27 }
  0x14   : > { %s898_s28 = smov [#allocation8]   ;;  %s1227_s2 = sld [smem:[#allocation17_spill]] }
  0x15   : > { %s1225_s25 = scalar_select %p979_p8, 1, 0 }
  0x16   : > { %p602_p10 = pneg %p979_p8  ;;  %s191_s29 = sshll.u32 %s898_s28, 4  ;;  %s992_s29 = int_to_ptr.vmem [resolvable:$true] %s191_s29 }
  0x18   : > { %p988_p11 = pnand %p602_p10, %p1216_p1 }
  0x1a   : > { %s685_s7 = scalar_lea.hbm %s1227_s2, 64  ;;  %p687_p13 = pneg %p988_p11 }
  0x1b   : > { %p686_p12 = scmp.ne.s32.totalorder %s1227_s2, %s685_s7  ;;  %p692_p5 = scmp.lt.u32.totalorder %s685_s7, %s1227_s2 }
  0x1d   : > { %p688_p0 = pnand %p687_p13, %p686_p12 }
  0x1f   : > { %p689_p3 = pneg %p688_p0 }
  0x21   : > { %p694_p7 = pnand %p692_p5, %p689_p3 }
  0x23   : > { %697 = shalt.err (!%p694_p7)
}
  0x24   : > { %s698_s12 = scalar_lea.vmem %s181_s27, 64  ;;  %p706_p2 = scmp.lt.s32.totalorder %s181_s27, %s181_s27 }
  0x25   : > { %p699_p10 = scmp.ne.s32.totalorder %s181_s27, %s698_s12  ;;  %p707_p6 = scmp.lt.s32.totalorder %s698_s12, %s698_s12 }
  0x27   : > { %p701_p9 = pnand %p699_p10, %p687_p13  ;;  %p708_p4 = por %p707_p6, %p706_p2 }
  0x29   : > { %p702_p1 = pneg %p701_p9 }
  0x2b   : > { %p709_p8 = pnand %p708_p4, %p702_p1 }
  0x2d   : > { %712 = shalt.err (!%p709_p8)
}
  0x2e   : > { %605 = dma.hbm_to_vmem [thread:$0]  (!%p988_p11), %s1227_s2, 64, %s181_s27, [#allocation6]  }
  0x2f   : > { %s1228_s3 = sld [smem:[#allocation18_spill]] }
  0x35   : > { %s713_s28 = scalar_lea.hbm %s1228_s3, 64 }
  0x36   : > { %p714_p9 = scmp.ne.s32.totalorder %s1228_s3, %s713_s28  ;;  %p720_p4 = scmp.lt.u32.totalorder %s713_s28, %s1228_s3 }
  0x38   : > { %p716_p2 = pnand %p714_p9, %p687_p13 }
  0x3a   : > { %p717_p1 = pneg %p716_p2 }
  0x3c   : > { %p722_p6 = pnand %p720_p4, %p717_p1 }
  0x3e   : > { %725 = shalt.err (!%p722_p6)
}
  0x3f   : > { %s726_s27 = scalar_lea.vmem %s992_s29, 64  ;;  %p734_p3 = scmp.lt.s32.totalorder %s992_s29, %s992_s29 }
  0x40   : > { %p727_p8 = scmp.ne.s32.totalorder %s992_s29, %s726_s27  ;;  %p735_p5 = scmp.lt.s32.totalorder %s726_s27, %s726_s27 }
  0x42   : > { %p729_p12 = pnand %p727_p8, %p687_p13  ;;  %p736_p7 = por %p735_p5, %p734_p3 }
  0x44   : > { %p730_p0 = pneg %p729_p12 }
  0x46   : > { %p737_p10 = pnand %p736_p7, %p730_p0 }
  0x48   : > { %740 = shalt.err (!%p737_p10)
}
  0x49   : > { %608 = dma.hbm_to_vmem [thread:$0]  (!%p988_p11), %s1228_s3, 64, %s992_s29, [#allocation9]  }
  0x4a   : > { %s36_s11 = sadd.s32 1, %s891_s19  ;;  %s45_s12 = sadd.s32 1, %s883_s17 }
  0x4b   : > { %p38_p13 = scmp.ge.s32.totalorder %s36_s11, 2  ;;  %p52_p9 = scmp.ne.s32.totalorder %s883_s17, %s879_s16 }
  0x4c   : > { %p53_p2 = scmp.eq.s32.totalorder %s895_s20, 0  ;;  %p622_p1 = scmp.lt.s32.totalorder %s895_s20, 2 }
  0x4d   : > { %s1249_s11 = smov (%p38_p13, %s36_s11), 0  ;;  %p1230_p6 = scmp.eq.s32.totalorder %s960_s21, 1 }
  0x4e   : > { %1229 = sst [smem:[#allocation16_spill]] %s1249_s11  ;;  %p54_p4 = por %p53_p2, %p52_p9 }
  0x4f   : > { %p1051_p8 = por %p1230_p6, %p52_p9  ;;  %s40_s13 = ssub.s32 %s891_s19, %s1249_s11 }
  0x50   : > { %s202_s14 = sand.u32 1, %s883_s17   ;;  %p43_p12 = scmp.eq.s32.totalorder %s40_s13, 0 }
  0x51   : > { %s1231_s30 = scalar_select %p1051_p8, 1, 0 }
  0x52   : > { %s1058_s29 = sshll.u32 %s202_s14, 3  ;;  %s585_s22 = sshll.u32 %s891_s19, 7 }
  0x53   : > { %s1062_s26 = scalar_select %p43_p12, %s883_s17, %s45_s12  }
  0x54   : > { %s1067_s6 = scalar_lea.hbm %s1211_s0, %s585_s22  ;;  %s206_s7 = scalar_lea.vmem [#allocation2], %s1058_s29 }
  0x55   : > { %s216_s8 = sshll.u32 %s206_s7, 4  ;;  %p1072_p11 = pnand %p622_p1, %p54_p4  ;;  %s1076_s8 = int_to_ptr.vmem [resolvable:$true] %s216_s8 }
  0x56   : > { %s1081_s12 = scalar_lea.hbm %s1212_s1, %s585_s22  ;;  %s203_s13 = scalar_lea.sflag [#allocation3], %s202_s14 }
  0x57   : > { %s741_s28 = scalar_lea.hbm %s1067_s6, 128  ;;  %p743_p3 = pneg %p1072_p11 }
  0x58   : > { %p742_p0 = scmp.ne.s32.totalorder %s1067_s6, %s741_s28  ;;  %s746_s2 = scalar_lea.hbm %s1211_s0, 256 }
  0x59   : > { %p747_p10 = scmp.lt.u32.totalorder %s1067_s6, %s1211_s0  ;;  %p748_p13 = scmp.lt.u32.totalorder %s746_s2, %s741_s28 }
  0x5a   : > { %p744_p5 = pnand %p743_p3, %p742_p0  ;;  %p750_p2 = scmp.lt.u32.totalorder %s741_s28, %s1067_s6 }
  0x5b   : > { %p749_p9 = por %p748_p13, %p747_p10 }
  0x5c   : > { %p745_p7 = pneg %p744_p5 }
  0x5d   : > { %p751_p1 = por %p750_p2, %p749_p9 }
  0x5f   : > { %p752_p4 = pnand %p751_p1, %p745_p7 }
  0x61   : > { %755 = shalt.err (!%p752_p4)
}
  0x62   : > { %s756_s14 = scalar_lea.vmem %s1076_s8, 128  ;;  %s899_s22 = smov [#allocation2]  }
  0x63   : > { %p757_p6 = scmp.ne.s32.totalorder %s1076_s8, %s756_s14  ;;  %s761_s9 = sshll.u32 %s899_s22, 4  ;;  %s762_s9 = int_to_ptr.vmem [resolvable:$false] %s761_s9 }
  0x64   : > { %s763_s3 = scalar_lea.vmem %s762_s9, 256  ;;  %p764_p5 = scmp.lt.s32.totalorder %s1076_s8, %s762_s9 }
  0x65   : > { %p759_p12 = pnand %p757_p6, %p743_p3  ;;  %p765_p10 = scmp.lt.s32.totalorder %s763_s3, %s756_s14 }
  0x67   : > { %p760_p0 = pneg %p759_p12  ;;  %p766_p13 = por %p765_p10, %p764_p5 }
  0x69   : > { %p767_p9 = pnand %p766_p13, %p760_p0 }
  0x6b   : > { %770 = shalt.err (!%p767_p9)
}
  0x6c   : > { %612 = dma.hbm_to_vmem [thread:$0]  (!%p1072_p11), %s1067_s6, 128, %s1076_s8, %s203_s13  }
  0x6d   : > { %s223_s2 = sand.u32 1, %s895_s20   ;;  %s227_s11 = scalar_lea.vmem [#allocation5], %s1058_s29 }
  0x6e   : > { %s237_s10 = sshll.u32 %s227_s11, 4  ;;  %s224_s28 = scalar_lea.sflag [#allocation6], %s223_s2  ;;  %s238_s10 = int_to_ptr.vmem [resolvable:$true] %s237_s10 }
  0x6f   : > { %s771_s5 = scalar_lea.hbm %s1081_s12, 128  ;;  %s776_s22 = scalar_lea.hbm %s1212_s1, 256 }
  0x70   : > { %p772_p7 = scmp.ne.s32.totalorder %s1081_s12, %s771_s5  ;;  %p777_p4 = scmp.lt.u32.totalorder %s1081_s12, %s1212_s1 }
  0x71   : > { %p778_p6 = scmp.lt.u32.totalorder %s776_s22, %s771_s5  ;;  %p780_p0 = scmp.lt.u32.totalorder %s771_s5, %s1081_s12 }
  0x72   : > { %p774_p2 = pnand %p772_p7, %p743_p3 }
  0x73   : > { %p779_p12 = por %p778_p6, %p777_p4 }
  0x74   : > { %p775_p1 = pneg %p774_p2 }
  0x75   : > { %p781_p5 = por %p780_p0, %p779_p12 }
  0x77   : > { %p782_p10 = pnand %p781_p5, %p775_p1 }
  0x79   : > { %785 = shalt.err (!%p782_p10)
}
  0x7a   : > { %s786_s29 = scalar_lea.vmem %s238_s10, 128  ;;  %s900_s6 = smov [#allocation5]  }
  0x7b   : > { %p787_p13 = scmp.ne.s32.totalorder %s238_s10, %s786_s29  ;;  %s791_s8 = sshll.u32 %s900_s6, 4  ;;  %s792_s8 = int_to_ptr.vmem [resolvable:$false] %s791_s8 }
  0x7c   : > { %s793_s13 = scalar_lea.vmem %s792_s8, 256  ;;  %p794_p2 = scmp.lt.s32.totalorder %s238_s10, %s792_s8 }
  0x7d   : > { %p789_p9 = pnand %p787_p13, %p743_p3  ;;  %p795_p8 = scmp.lt.s32.totalorder %s793_s13, %s786_s29 }
  0x7f   : > { %p790_p7 = pneg %p789_p9  ;;  %p796_p4 = por %p795_p8, %p794_p2 }
  0x81   : > { %p797_p6 = pnand %p796_p4, %p790_p7 }
  0x83   : > { %800 = shalt.err (!%p797_p6)
}
  0x84   : > { %615 = dma.hbm_to_vmem [thread:$0]  (!%p1072_p11), %s1081_s12, 128, %s238_s10, %s224_s28  }
  0x85   : > { %p1233_p1 = scmp.ne.s32.totalorder %s1225_s25, 0 }
  0x86   : > { %s1132_s2 = sand.u32 (!%p1233_p1), 1, %s879_s16   ;;  %p1234_p8 = scmp.ne.s32.totalorder (!%p1233_p1), %s1223_s23, 0 }
  0x87   : > { %246 = sbr.rel (%p1233_p1) target bundleno = 408 (0x198), region = 36  ;;  %s1135_s11 = sshll.u32 (!%p1233_p1), %s1132_s2, 3 }
  0x88   : > { %s249_s5 = scalar_lea.sflag (!%p1233_p1), [#allocation3], %s1132_s2  ;;  %s252_s7 = scalar_lea.vmem (!%p1233_p1), [#allocation2], %s1135_s11 }
  0x8e   : > { %854 = dma.done.wait (%p1234_p8), %s249_s5, 128  }
  0x8f   : > { %856 = vsyncadd (%p1234_p8), %s249_s5, 4294967168  ;;  %s257_s25 = sand.u32 1, %s960_s21   ;;  %s261_s12 = scalar_lea.vmem [#allocation5], %s1135_s11 }
  0x90   : > { %s258_s27 = scalar_lea.sflag [#allocation6], %s257_s25 }
  0x91   : > { %858 = dma.done.wait (%p1234_p8), %s258_s27, 128  }
  0x92   : > { %860 = vsyncadd (%p1234_p8), %s258_s27, 4294967168  ;;  %p1235_p11 = scmp.eq.s32.totalorder %s960_s21, 0 }
  0x94   : > { %862 = dma.done.wait (%p1235_p11), [#allocation6], 64   ;;  %p1236_p3 = pmov %p1235_p11 }
  0x96   : > { %864 = vsyncadd (%p1236_p3), [#allocation6], 4294967232  ;;  %p1237_p12 = pmov %p1236_p3 }
  0x97   : > { %p1238_p0 = pmov %p1236_p3 }
  0x98   : > { %866 = dma.done.wait (%p1237_p12), [#allocation9], 64  }
  0x99   : > { %868 = vsyncadd (%p1238_p0), [#allocation9], 4294967232  ;;  %v901_v0 = vmov 0.0   ;;  %v902_v1 = vmov 0   ;;  %v302_v2 = vld [vmem:[%s252_s7] sm:$0xff]  ;;  %vm316_vm0 = vcmask 1043456  }
  0x9a   : > { %385 = vmatprep.mubr.f32.mxu0 %v901_v0  ;;  %678 = vset.pattern.permute.xlu0 %v902_v1  ;;  %v304_v3 = vld [vmem:[#allocation8] sm:$0xf]  ;;  %v311_v4 = vcombine.high %v302_v2, %v302_v2  ;;  %v303_v5 = vld [vmem:[#allocation7] sm:$0xf]  ;;  %vm312_vm1 = vcmask 31744   ;;  %v392_v6 = vld [vmem:[%s261_s12] sm:$0xff] }
  0x9b   : > { %307 = vperm.xlu0 %678, %v304_v3   ;;  %v394_v9 = vcombine.high %v392_v6, %v392_v6  ;;  %s587_s21 = sshll.u32 %s887_s18, 7  ;;  %s298_s23 = scalar_lea.vmem [#allocation10], %s1135_s11 }
  0x9c   : > { %577 = vmatprep.subr.msk.mxu0 %vm316_vm0, %v311_v4  ;;  %s430_s10 = sshll.u32 %s298_s23, 4  ;;  %s1162_s22 = scalar_lea.hbm %s1215_s4, %s587_s21  ;;  %s1164_s10 = int_to_ptr.vmem [resolvable:$true] %s430_s10 }
  0x9d   : > { %578 = vmatpush1.msk.msra.mxu0 %vm316_vm0, %v302_v2  ;;  %s414_s9 = scalar_lea.sflag [#allocation4], %s1132_s2  ;;  %s801_s3 = scalar_lea.vmem %s1164_s10, 128 }
  0x9e   : > { %579 = vmatmul.mubr.msk.f32.vlgmr.msra.gmra.mrb[0].mxu0 %vm312_vm1, %v303_v5  ;;  %p802_p5 = scmp.ne.s32.totalorder %s1164_s10, %s801_s3  ;;  %p1239_p10 = scmp.ne.s32.totalorder %s1231_s30, 0 }
  0x9f   : > { %s903_s18 = smov [#allocation10]  }
  0xa0   : > { %p803_p13 = pnand %p802_p5, %p1239_p10  ;;  %s805_s29 = sshll.u32 %s903_s18, 4  ;;  %s806_s29 = int_to_ptr.vmem [resolvable:$false] %s805_s29 }
  0xa1   : > { %s807_s6 = scalar_lea.vmem %s806_s29, 256  ;;  %p808_p7 = scmp.lt.s32.totalorder %s1164_s10, %s806_s29 }
  0xa2   : > { %p804_p9 = pneg %p803_p13  ;;  %p809_p2 = scmp.lt.s32.totalorder %s807_s6, %s801_s3 }
  0xa4   : > { %p810_p4 = por %p809_p2, %p808_p7 }
  0xa6   : > { %p811_p6 = pnand %p810_p4, %p804_p9 }
 0x11a   : > { %v308_v7 = vpop.permute.xlu0 %307 }
 0x171   : > { %v387_v8 = vpop.f32.mrb[0].mxu0 }
 0x172   : > { %v388_v10 = vadd.f32 %v387_v8, %v308_v7  ;;  %v389_v11 = vpop.f32.mrb[1].mxu0 }
 0x173   : > { %v390_v12 = vadd.f32 %v389_v11, %v308_v7 }
 0x174   : > { %v396_v13 = vadd.f32 %v392_v6, %v388_v10 }
 0x175   : > { %v397_v14 = vadd.f32 %v394_v9, %v390_v12 }
 0x176   : > { %v400_v15 = vmul.f32 0.70710677, %v396_v13  ;;  %v398_v19 = vmul.f32 0.5, %v396_v13 }
 0x177   : > { %v401_v16 = vmul.f32 0.70710677, %v397_v14  ;;  %v399_v21 = vmul.f32 0.5, %v397_v14 }
 0x178   : > { %681 = verf.f32 %v400_v15 }
 0x179   : > { %683 = verf.f32 %v401_v16 }
 0x182   : > { %v682_v17 = vpop.eup %681 }
 0x183   : > { %v684_v18 = vpop.eup %683  ;;  %v404_v20 = vadd.f32 1.0, %v682_v17 }
 0x184   : > { %v405_v22 = vadd.f32 1.0, %v684_v18 }
 0x185   : > { %v406_v23 = vmul.f32 %v404_v20, %v398_v19 }
 0x186   : > { %v407_v24 = vmul.f32 %v405_v22, %v399_v21 }
 0x188   : > { %v410_v25 = vcombine.low %v406_v23, %v407_v24 }
 0x18a   : > { %412 = vst [vmem:[%s298_s23] sm:$0xff] %v410_v25 }
 0x18b   : > { %814 = shalt.err (!%p811_p6)
}
 0x18c   : > { %s815_s8 = scalar_lea.hbm %s1162_s22, 128  ;;  %s819_s11 = scalar_lea.hbm %s1215_s4, 256 }
 0x18d   : > { %p816_p1 = scmp.ne.s32.totalorder %s1162_s22, %s815_s8  ;;  %p820_p3 = scmp.lt.u32.totalorder %s1162_s22, %s1215_s4 }
 0x18e   : > { %p821_p12 = scmp.lt.u32.totalorder %s819_s11, %s815_s8  ;;  %p823_p5 = scmp.lt.u32.totalorder %s815_s8, %s1162_s22 }
 0x18f   : > { %p817_p8 = pnand %p816_p1, %p1239_p10 }
 0x190   : > { %p822_p0 = por %p821_p12, %p820_p3 }
 0x191   : > { %p818_p11 = pneg %p817_p8 }
 0x192   : > { %p824_p13 = por %p823_p5, %p822_p0 }
 0x194   : > { %p825_p9 = pnand %p824_p13, %p818_p11 }
 0x196   : > { %828 = shalt.err (!%p825_p9)
}
 0x197   : > { %600 = dma.vmem_to_hbm [thread:$0]  (%p1239_p10), %s1164_s10, 128, %s1162_s22, %s414_s9  }
 0x198 PF: > { %s442_s25 = sand.u32 1, %s875_s15   ;;  %p1240_p7 = scmp.ne.s32.totalorder %s1224_s24, 0 }
 0x199   : > { %p1241_p2 = scmp.ge.s32.totalorder %s895_s20, 2  ;;  %s443_s27 = scalar_lea.sflag [#allocation4], %s442_s25 }
 0x19b   : > { %p617_p4 = pnand %p1241_p2, %p1240_p7 }
 0x19d   : > { %870 = dma.done.wait (!%p617_p4), %s443_s27, 128  }
 0x19e   : > { %872 = vsyncadd (!%p617_p4), %s443_s27, 4294967168  ;;  %s24_s20 = sadd.s32 1, %s895_s20   ;;  %s1242_s30 = sld [smem:[#allocation16_spill]] }
 0x19f   : > { %p21_p6 = scmp.ge.s32.totalorder %s24_s20, 4   ;;  %s1243_s15 = smov %s879_s16 }
 0x1a0   : > { %s1244_s16 = smov %s883_s17  ;;  %s1245_s17 = smov %s1062_s26 }
 0x1a1   : > { %s1246_s18 = smov %s891_s19  ;;  %23 = sbr.rel (!%p21_p6) target bundleno = 12 (0xc), region = 102 }
 0x1a4   : > { %s1247_s19 = smov %s1242_s30 }
 0x1a8   :  { %448 = vsyncpa [#allocation3], 1 }
 0x1a9   :  { %450 = vsyncpa [#allocation3 + $0x1], 1 }
 0x1aa   :  { %451 = vsyncpa [#allocation6], 1 }
 0x1ab   :  { %453 = vsyncpa [#allocation6 + $0x1], 1 }
 0x1ac   :  { %454 = vsyncpa [#allocation9], 1 }
 0x1ad   :  { %455 = vsyncpa [#allocation4], 1 }
 0x1ae   :  { %457 = vsyncpa [#allocation4 + $0x1], 1 }

</bundles_post_ra>
